<compile_context>
chip_gen: v6e
topology: v6e:2x2x1
jax: 0.10.0
libtpu: 0.0.40
codegen_flags: <defaults>
</compile_context>

<pallas_src>
import jax
import jax.numpy as jnp
from jax.experimental import pallas as pl
from jax.experimental.pallas import tpu as pltpu


def calculate_laplacian_with_self_loop(adj):
    """Symmetric-normalized adjacency with self loops: D^-1/2 (A+I) D^-1/2.

    Note: (mat @ d_mat).T @ d_mat equals D^-1/2 (A+I) D^-1/2 only for a symmetric
    adjacency; this mirrors the original PyTorch helper's assumption.
    """
    n = adj.shape[0]
    mat = adj + jnp.eye(n, dtype=adj.dtype)
    row_sum = mat.sum(axis=1)
    d_inv_sqrt = jnp.power(row_sum, -0.5)
    d_inv_sqrt = jnp.where(jnp.isinf(d_inv_sqrt), 0.0, d_inv_sqrt)
    d_mat = jnp.diag(d_inv_sqrt)
    return (mat @ d_mat).T @ d_mat


# ---------------------------------------------------------------------------
# Fused kernel: one (row-tile i, K-tile k) step of   out = (L @ [inp|hid]) @ W + bias
# ---------------------------------------------------------------------------
def _tgcn_fused_kernel(inp_ref, hid_ref, lap_ref, w1_ref, w0_ref, bias_ref,
                       out_ref, acc_h_ref, acc_i_ref):
    # inp_ref : (tk, B)    f32  node-major input column(s)
    # hid_ref : (B, tk, H) f32  hidden state, native layout (bf16 cast happens in-kernel)
    # lap_ref : (tn, tk)   bf16 normalized-laplacian tile
    # w1_ref  : (H, O)     f32  W[1:]  (hidden rows of the weight)
    # w0_ref  : (1, O)     f32  W[0:1] (input row of the weight)
    # bias_ref: (1, O)     f32
    # out_ref : (B, tn, O) f32  written only on the last K step
    # acc_h_ref: (tn, B*H) f32  accumulator for L @ hidden (batch folded into lanes)
    # acc_i_ref: (tn, B)   f32  accumulator for L @ inputs
    b_sz, _, h = hid_ref.shape
    k = pl.program_id(1)

    @pl.when(k == 0)
    def _init():
        acc_h_ref[...] = jnp.zeros_like(acc_h_ref)
        acc_i_ref[...] = jnp.zeros_like(acc_i_ref)

    lap = lap_ref[...]
    # Fold batch into MXU lanes: (B, tk, H) -> (tk, B*H).  The bf16 cast is done here,
    # in-kernel, so the wrapper never makes an extra HBM pass over the hidden state.
    x_h = jnp.concatenate([hid_ref[b] for b in range(b_sz)], axis=1).astype(jnp.bfloat16)
    acc_h_ref[...] += jnp.dot(lap, x_h, preferred_element_type=jnp.float32)
    acc_i_ref[...] += jnp.dot(lap, inp_ref[...].astype(jnp.bfloat16),
                              preferred_element_type=jnp.float32)

    @pl.when(k == pl.num_programs(1) - 1)
    def _finalize():
        ax_h = acc_h_ref[...]                       # (tn, B*H) f32
        ax_i = acc_i_ref[...]                       # (tn, B)   f32
        w1 = w1_ref[...]
        w0 = w0_ref[...]
        bias = bias_ref[...]
        for b in range(b_sz):
            # (H+1) -> O feature mix per batch, kept f32 for accuracy; output stored
            # directly in (B, tn, O) layout (no wrapper transpose afterwards).
            y_b = jnp.dot(ax_h[:, b * h:(b + 1) * h], w1,
                          preferred_element_type=jnp.float32)          # (tn, O)
            y_b = y_b + ax_i[:, b:b + 1] * w0 + bias                   # rank-1 input term
            out_ref[b] = y_b.astype(out_ref.dtype)


# ---------------------------------------------------------------------------
# VMEM-budget-aware planning
# ---------------------------------------------------------------------------
def _round_up(x, m):
    return ((x + m - 1) // m) * m


def _vmem_capacity_bytes():
    """Physical VMEM per core; conservative 64 MiB (v7x) fallback if the query fails."""
    cap = 64 * 1024 * 1024
    try:
        info = pltpu.get_tpu_info()
        cap = int(getattr(info, "vmem_capacity_bytes", cap)) or cap
    except Exception:
        pass
    return cap


def _plan_tiles(n, b, h, o, budget_bytes):
    """Pick (padded node count NP, square node tile T) so the working set fits VMEM."""
    if n <= 256:
        np_ = _round_up(n, 8)            # full-dim blocks; single grid step
        return np_, np_
    np_ = _round_up(n, 128)              # lane/sublane-safe padding for real graphs
    valid = [t for t in range(128, np_ + 1, 128) if np_ % t == 0]

    def footprint(t):
        return (2 * t * t * 2            # laplacian tile, bf16, double-buffered
                + 2 * b * t * h * 4      # hidden tile, f32, double-buffered
                + 2 * t * b * 4          # input tile, double-buffered
                + 2 * b * t * o * 4      # output tile, f32, double-buffered
                + t * b * h * 4          # acc_h scratch
                + t * b * 4              # acc_i scratch
                + 2 * (h + 1) * o * 4)   # weights + bias (tiny)

    fitting = [t for t in valid if footprint(t) <= budget_bytes]
    if not fitting:
        return np_, 128                  # smallest legal tile; may exceed budget for huge B*H*O
    t = max(fitting)                     # biggest tile => fewest hidden-stream re-reads
    if np_ // t < 2:
        # Prefer >=2 row tiles (software pipelining + dual-TensorCore on v7x) when it
        # costs at most a 2x re-read of the hidden stream.
        alts = [a for a in fitting if np_ // a == 2]
        if alts:
            t = max(alts)
    return np_, t


# ---------------------------------------------------------------------------
# Wrapper
# ---------------------------------------------------------------------------
def tgcn_graph_convolution(inputs, hidden_state, laplacian, weights, biases,
                           num_gru_units, output_dim):
    """inputs: (B, N) f32; hidden_state: (B, N*H) f32 -> (B, N*output_dim) f32."""
    B, N = inputs.shape
    H, O = num_gru_units, output_dim

    cap = _vmem_capacity_bytes()
    vmem_limit = max(32 * 1024 * 1024, min(cap - 24 * 1024 * 1024, int(cap * 0.8)))
    NP, T = _plan_tiles(N, B, H, O, int(vmem_limit * 0.9))
    R = NP // T
    pad = NP - N

    # Laplacian: cast once in the wrapper (re-read R times by the kernel, so the one-time
    # bf16 cast amortizes); zero-pad rows/cols so padded nodes are inert.
    lap = laplacian.astype(jnp.bfloat16)
    # Hidden state stays f32 in its native layout; the bf16 cast happens inside the kernel.
    hid = hidden_state.reshape(B, N, H)
    # Inputs are tiny ((B, N)): transpose to node-major (N, B) in the wrapper.
    inp_nm = inputs.T
    if pad:
        lap = jnp.pad(lap, ((0, pad), (0, pad)))
        hid = jnp.pad(hid, ((0, 0), (0, pad), (0, 0)))
        inp_nm = jnp.pad(inp_nm, ((0, pad), (0, 0)))

    w1 = weights[1:, :].astype(jnp.float32)        # (H, O) hidden rows of W
    w0 = weights[0:1, :].astype(jnp.float32)       # (1, O) input row of W
    bias2d = biases.reshape(1, O).astype(jnp.float32)

    flops = 2 * NP * NP * B * (H + 1) + 2 * NP * B * H * O + 3 * NP * B * O
    bytes_accessed = (NP * NP * 2                            # laplacian (each tile once)
                      + R * (B * NP * H * 4 + NP * B * 4)    # hidden/input per row tile
                      + B * NP * O * 4                       # output
                      + (H + 1) * O * 4 + O * 4)             # weights + bias

    out_bno = pl.pallas_call(
        _tgcn_fused_kernel,
        out_shape=jax.ShapeDtypeStruct((B, NP, O), jnp.float32),
        grid_spec=pltpu.PrefetchScalarGridSpec(
            num_scalar_prefetch=0,
            grid=(R, R),                                        # (row tiles, K reduction)
            in_specs=[
                pl.BlockSpec((T, B), lambda i, k: (k, 0)),            # inputs, node-major
                pl.BlockSpec((B, T, H), lambda i, k: (0, k, 0)),      # hidden, native layout
                pl.BlockSpec((T, T), lambda i, k: (i, k)),            # laplacian tile
                pl.BlockSpec((H, O), lambda i, k: (0, 0)),            # W[1:]  (invariant)
                pl.BlockSpec((1, O), lambda i, k: (0, 0)),            # W[0:1] (invariant)
                pl.BlockSpec((1, O), lambda i, k: (0, 0)),            # bias   (invariant)
            ],
            out_specs=pl.BlockSpec((B, T, O), lambda i, k: (0, i, 0)),
            scratch_shapes=[
                pltpu.VMEM((T, B * H), jnp.float32),   # accumulator for L @ hidden
                pltpu.VMEM((T, B), jnp.float32),       # accumulator for L @ inputs
            ],
        ),
        compiler_params=pltpu.CompilerParams(
            dimension_semantics=("parallel", "arbitrary"),   # row tiles shard across TCs
            vmem_limit_bytes=vmem_limit,
        ),
        cost_estimate=pl.CostEstimate(flops=flops, transcendentals=0,
                                      bytes_accessed=bytes_accessed),
    )(inp_nm, hid, lap, w1, w0, bias2d)

    if pad:
        out_bno = out_bno[:, :N, :]
    return out_bno.reshape(B, N * O)                 # contiguous reshape only, no transpose


def _reference(inputs, hidden_state, laplacian, weights, biases, H, O):
    B, N = inputs.shape
    hidden = hidden_state.reshape(B, N, H)
    x = jnp.concatenate([inputs.reshape(B, N, 1), hidden], axis=2)    # (B, N, H+1)
    ax = jnp.einsum("nm,bmk->bnk", laplacian, x)
    out = jnp.einsum("bnk,ko->bno", ax, weights) + biases
    return out.reshape(B, N * O)


if __name__ == "__main__":
    # Small shapes consistent with the module (O = 2*H as in T-GCN's graph_conv1).
    batch_size = 2
    num_nodes = 16
    num_gru_units = 32
    output_dim = 64
    bias_init_value = 1.0

    key = jax.random.PRNGKey(0)
    k_adj, k_w, k_in, k_h = jax.random.split(key, 4)

    # Deterministic synthetic symmetric adjacency (nonnegative).
    a = jax.random.uniform(k_adj, (num_nodes, num_nodes), dtype=jnp.float32)
    adj = ((a + a.T) > 1.0).astype(jnp.float32)
    laplacian = calculate_laplacian_with_self_loop(adj)

    # Parameters (xavier_uniform weights, constant biases).
    fan_in, fan_out = num_gru_units + 1, output_dim
    bound = (6.0 / (fan_in + fan_out)) ** 0.5
    weights = jax.random.uniform(k_w, (fan_in, fan_out), dtype=jnp.float32,
                                 minval=-bound, maxval=bound)
    biases = jnp.full((output_dim,), bias_init_value, dtype=jnp.float32)

    # Inputs.
    inputs = jax.random.normal(k_in, (batch_size, num_nodes), dtype=jnp.float32)
    hidden_state = jax.random.normal(
        k_h, (batch_size, num_nodes * num_gru_units), dtype=jnp.float32)

    out = tgcn_graph_convolution(inputs, hidden_state, laplacian, weights, biases,
                                 num_gru_units, output_dim)
    out = jax.block_until_ready(out)

    ref = _reference(inputs, hidden_state, laplacian, weights, biases,
                     num_gru_units, output_dim)
    assert out.shape == (batch_size, num_nodes * output_dim)
    # bf16 MXU operands for the graph propagation (f32 accumulation + f32 feature mix)
    # vs the all-f32 reference -> relaxed tolerance.
    err = float(jnp.max(jnp.abs(out - ref)))
    assert jnp.allclose(out, ref, atol=3e-2, rtol=3e-2), (
        "mismatch vs reference, max abs err = %f" % err)

    print("KERNEL_OK")
</pallas_src>

<mosaic_0001>
module attributes {stable_mosaic.version = 11 : i64} {
  func.func @_tgcn_fused_kernel(%arg0: i32, %arg1: i32, %arg2: memref<16x2xf32, #tpu.memory_space<vmem>>, %arg3: memref<2x16x32xf32, #tpu.memory_space<vmem>>, %arg4: memref<16x16xbf16, #tpu.memory_space<vmem>>, %arg5: memref<32x64xf32, #tpu.memory_space<vmem>>, %arg6: memref<1x64xf32, #tpu.memory_space<vmem>>, %arg7: memref<1x64xf32, #tpu.memory_space<vmem>>, %arg8: memref<2x16x64xf32, #tpu.memory_space<vmem>>, %arg9: memref<16x64xf32, #tpu.memory_space<vmem>>, %arg10: memref<16x2xf32, #tpu.memory_space<vmem>>) attributes {dimension_semantics = [#tpu.dimension_semantics<parallel>, #tpu.dimension_semantics<arbitrary>], iteration_bounds = array<i64: 1, 1>, scalar_prefetch = 0 : i64, scratch_operands = 2 : i64, tpu.core_type = #tpu.core_type<tc>, window_params = [{transform_indices = @transform_0, window_bounds = array<i64: 16, 2>}, {transform_indices = @transform_1, window_bounds = array<i64: 2, 16, 32>}, {transform_indices = @transform_2, window_bounds = array<i64: 16, 16>}, {pipeline_mode = #tpu.pipeline_mode<synchronous>, transform_indices = @transform_3, window_bounds = array<i64: 32, 64>}, {pipeline_mode = #tpu.pipeline_mode<synchronous>, transform_indices = @transform_4, window_bounds = array<i64: 1, 64>}, {pipeline_mode = #tpu.pipeline_mode<synchronous>, transform_indices = @transform_5, window_bounds = array<i64: 1, 64>}, {transform_indices = @transform_6, window_bounds = array<i64: 2, 16, 64>}]} {
    %c0_i32 = arith.constant 0 : i32
    %0 = arith.cmpi eq, %arg1, %c0_i32 : i32
    %1 = arith.extui %0 : i1 to i32
    %c0_i32_0 = arith.constant 0 : i32
    %2 = arith.cmpi ne, %1, %c0_i32_0 : i32
    scf.if %2 {
      %cst_20 = arith.constant 0.000000e+00 : f32
      %23 = vector.broadcast %cst_20 : f32 to vector<16x64xf32>
      %c0_21 = arith.constant 0 : index
      %c0_22 = arith.constant 0 : index
      %24 = vector.load %arg9[%c0_21, %c0_22] : memref<16x64xf32, #tpu.memory_space<vmem>>, vector<16x64xf32>
      tpu.vector_store %arg9[%c0_21, %c0_22], %23 {strides = array<i32>} : memref<16x64xf32, #tpu.memory_space<vmem>>, vector<16x64xf32>,
      %cst_23 = arith.constant 0.000000e+00 : f32
      %25 = vector.broadcast %cst_23 : f32 to vector<16x2xf32>
      %c0_24 = arith.constant 0 : index
      %c0_25 = arith.constant 0 : index
      %26 = vector.load %arg10[%c0_24, %c0_25] : memref<16x2xf32, #tpu.memory_space<vmem>>, vector<16x2xf32>
      tpu.vector_store %arg10[%c0_24, %c0_25], %25 {strides = array<i32>} : memref<16x2xf32, #tpu.memory_space<vmem>>, vector<16x2xf32>,
    } else {
    }
    %c0 = arith.constant 0 : index
    %c0_1 = arith.constant 0 : index
    %3 = vector.load %arg4[%c0, %c0_1] : memref<16x16xbf16, #tpu.memory_space<vmem>>, vector<16x16xbf16>
    %c0_2 = arith.constant 0 : index
    %c0_3 = arith.constant 0 : index
    %c0_4 = arith.constant 0 : index
    %4 = vector.load %arg3[%c0_2, %c0_3, %c0_4] : memref<2x16x32xf32, #tpu.memory_space<vmem>>, vector<1x16x32xf32>
    %5 = vector.shape_cast %4 : vector<1x16x32xf32> to vector<16x32xf32>
    %c1 = arith.constant 1 : index
    %c0_5 = arith.constant 0 : index
    %c0_6 = arith.constant 0 : index
    %6 = vector.load %arg3[%c1, %c0_5, %c0_6] : memref<2x16x32xf32, #tpu.memory_space<vmem>>, vector<1x16x32xf32>
    %7 = vector.shape_cast %6 : vector<1x16x32xf32> to vector<16x32xf32>
    %8 = tpu.concatenate %5, %7 in 1 : vector<16x32xf32>, vector<16x32xf32> -> vector<16x64xf32>
    %9 = arith.truncf %8 : vector<16x64xf32> to vector<16x64xbf16>
    %c0_7 = arith.constant 0 : index
    %c0_8 = arith.constant 0 : index
    %10 = vector.load %arg9[%c0_7, %c0_8] : memref<16x64xf32, #tpu.memory_space<vmem>>, vector<16x64xf32>
    %cst = arith.constant dense<0.000000e+00> : vector<16x64xf32>
    %11 = tpu.matmul %3, %9, %cst {dimension_numbers = #tpu.dot_dimension_numbers<[1], [0], [0], [1], [0, 0, 1, 1], [], []>} : vector<16x16xbf16>, vector<16x64xbf16>, vector<16x64xf32> -> vector<16x64xf32>
    %12 = arith.addf %10, %11 : vector<16x64xf32>
    %c0_9 = arith.constant 0 : index
    %c0_10 = arith.constant 0 : index
    %13 = vector.load %arg9[%c0_9, %c0_10] : memref<16x64xf32, #tpu.memory_space<vmem>>, vector<16x64xf32>
    tpu.vector_store %arg9[%c0_9, %c0_10], %12 {strides = array<i32>} : memref<16x64xf32, #tpu.memory_space<vmem>>, vector<16x64xf32>,
    %c0_11 = arith.constant 0 : index
    %c0_12 = arith.constant 0 : index
    %14 = vector.load %arg10[%c0_11, %c0_12] : memref<16x2xf32, #tpu.memory_space<vmem>>, vector<16x2xf32>
    %c0_13 = arith.constant 0 : index
    %c0_14 = arith.constant 0 : index
    %15 = vector.load %arg2[%c0_13, %c0_14] : memref<16x2xf32, #tpu.memory_space<vmem>>, vector<16x2xf32>
    %16 = arith.truncf %15 : vector<16x2xf32> to vector<16x2xbf16>
    %cst_15 = arith.constant dense<0.000000e+00> : vector<16x2xf32>
    %17 = tpu.matmul %3, %16, %cst_15 {dimension_numbers = #tpu.dot_dimension_numbers<[1], [0], [0], [1], [0, 0, 1, 1], [], []>} : vector<16x16xbf16>, vector<16x2xbf16>, vector<16x2xf32> -> vector<16x2xf32>
    %18 = arith.addf %14, %17 : vector<16x2xf32>
    %c0_16 = arith.constant 0 : index
    %c0_17 = arith.constant 0 : index
    %19 = vector.load %arg10[%c0_16, %c0_17] : memref<16x2xf32, #tpu.memory_space<vmem>>, vector<16x2xf32>
    tpu.vector_store %arg10[%c0_16, %c0_17], %18 {strides = array<i32>} : memref<16x2xf32, #tpu.memory_space<vmem>>, vector<16x2xf32>,
    %c0_i32_18 = arith.constant 0 : i32
    %20 = arith.cmpi eq, %arg1, %c0_i32_18 : i32
    %21 = arith.extui %20 : i1 to i32
    %c0_i32_19 = arith.constant 0 : i32
    %22 = arith.cmpi ne, %21, %c0_i32_19 : i32
    scf.if %22 {
      %c0_20 = arith.constant 0 : index
      %c0_21 = arith.constant 0 : index
      %23 = vector.load %arg9[%c0_20, %c0_21] : memref<16x64xf32, #tpu.memory_space<vmem>>, vector<16x64xf32>
      %c0_22 = arith.constant 0 : index
      %c0_23 = arith.constant 0 : index
      %24 = vector.load %arg10[%c0_22, %c0_23] : memref<16x2xf32, #tpu.memory_space<vmem>>, vector<16x2xf32>
      %c0_24 = arith.constant 0 : index
      %c0_25 = arith.constant 0 : index
      %25 = vector.load %arg5[%c0_24, %c0_25] : memref<32x64xf32, #tpu.memory_space<vmem>>, vector<32x64xf32>
      %c0_26 = arith.constant 0 : index
      %c0_27 = arith.constant 0 : index
      %26 = vector.load %arg6[%c0_26, %c0_27] : memref<1x64xf32, #tpu.memory_space<vmem>>, vector<1x64xf32>
      %c0_28 = arith.constant 0 : index
      %c0_29 = arith.constant 0 : index
      %27 = vector.load %arg7[%c0_28, %c0_29] : memref<1x64xf32, #tpu.memory_space<vmem>>, vector<1x64xf32>
      %28 = vector.extract_strided_slice %23 {offsets = [0, 0], sizes = [16, 32], strides = [1, 1]} : vector<16x64xf32> to vector<16x32xf32>
      %cst_30 = arith.constant dense<0.000000e+00> : vector<16x64xf32>
      %29 = tpu.matmul %28, %25, %cst_30 {dimension_numbers = #tpu.dot_dimension_numbers<[1], [0], [0], [1], [0, 0, 1, 1], [], []>} : vector<16x32xf32>, vector<32x64xf32>, vector<16x64xf32> -> vector<16x64xf32>
      %30 = vector.extract_strided_slice %24 {offsets = [0, 0], sizes = [16, 1], strides = [1, 1]} : vector<16x2xf32> to vector<16x1xf32>
      %31 = vector.broadcast %30 : vector<16x1xf32> to vector<16x64xf32>
      %32 = vector.broadcast %26 : vector<1x64xf32> to vector<16x64xf32>
      %33 = arith.mulf %31, %32 : vector<16x64xf32>
      %34 = arith.addf %29, %33 : vector<16x64xf32>
      %35 = vector.broadcast %27 : vector<1x64xf32> to vector<16x64xf32>
      %36 = arith.addf %34, %35 : vector<16x64xf32>
      %c0_31 = arith.constant 0 : index
      %c0_32 = arith.constant 0 : index
      %c0_33 = arith.constant 0 : index
      %37 = vector.load %arg8[%c0_31, %c0_32, %c0_33] : memref<2x16x64xf32, #tpu.memory_space<vmem>>, vector<1x16x64xf32>
      %38 = vector.shape_cast %37 : vector<1x16x64xf32> to vector<16x64xf32>
      %39 = vector.shape_cast %36 : vector<16x64xf32> to vector<1x16x64xf32>
      tpu.vector_store %arg8[%c0_31, %c0_32, %c0_33], %39 {strides = array<i32>} : memref<2x16x64xf32, #tpu.memory_space<vmem>>, vector<1x16x64xf32>,
      %40 = vector.extract_strided_slice %23 {offsets = [0, 32], sizes = [16, 32], strides = [1, 1]} : vector<16x64xf32> to vector<16x32xf32>
      %cst_34 = arith.constant dense<0.000000e+00> : vector<16x64xf32>
      %41 = tpu.matmul %40, %25, %cst_34 {dimension_numbers = #tpu.dot_dimension_numbers<[1], [0], [0], [1], [0, 0, 1, 1], [], []>} : vector<16x32xf32>, vector<32x64xf32>, vector<16x64xf32> -> vector<16x64xf32>
      %42 = vector.extract_strided_slice %24 {offsets = [0, 1], sizes = [16, 1], strides = [1, 1]} : vector<16x2xf32> to vector<16x1xf32>
      %43 = vector.broadcast %42 : vector<16x1xf32> to vector<16x64xf32>
      %44 = vector.broadcast %26 : vector<1x64xf32> to vector<16x64xf32>
      %45 = arith.mulf %43, %44 : vector<16x64xf32>
      %46 = arith.addf %41, %45 : vector<16x64xf32>
      %47 = vector.broadcast %27 : vector<1x64xf32> to vector<16x64xf32>
      %48 = arith.addf %46, %47 : vector<16x64xf32>
      %c1_35 = arith.constant 1 : index
      %c0_36 = arith.constant 0 : index
      %c0_37 = arith.constant 0 : index
      %49 = vector.load %arg8[%c1_35, %c0_36, %c0_37] : memref<2x16x64xf32, #tpu.memory_space<vmem>>, vector<1x16x64xf32>
      %50 = vector.shape_cast %49 : vector<1x16x64xf32> to vector<16x64xf32>
      %51 = vector.shape_cast %48 : vector<16x64xf32> to vector<1x16x64xf32>
      tpu.vector_store %arg8[%c1_35, %c0_36, %c0_37], %51 {strides = array<i32>} : memref<2x16x64xf32, #tpu.memory_space<vmem>>, vector<1x16x64xf32>,
    } else {
    }
    return
  }
  func.func @transform_0(%arg0: i32, %arg1: i32) -> (i32, i32) {
    %c0_i32 = arith.constant 0 : i32
    %c0_i32_0 = arith.constant 0 : i32
    return %arg1, %c0_i32 : i32, i32
  }
  func.func @transform_1(%arg0: i32, %arg1: i32) -> (i32, i32, i32) {
    %c0_i32 = arith.constant 0 : i32
    %c0_i32_0 = arith.constant 0 : i32
    %c0_i32_1 = arith.constant 0 : i32
    return %c0_i32, %arg1, %c0_i32_0 : i32, i32, i32
  }
  func.func @transform_2(%arg0: i32, %arg1: i32) -> (i32, i32) {
    %c0_i32 = arith.constant 0 : i32
    return %arg0, %arg1 : i32, i32
  }
  func.func @transform_3(%arg0: i32, %arg1: i32) -> (i32, i32) {
    %c0_i32 = arith.constant 0 : i32
    %c0_i32_0 = arith.constant 0 : i32
    %c0_i32_1 = arith.constant 0 : i32
    return %c0_i32, %c0_i32_0 : i32, i32
  }
  func.func @transform_4(%arg0: i32, %arg1: i32) -> (i32, i32) {
    %c0_i32 = arith.constant 0 : i32
    %c0_i32_0 = arith.constant 0 : i32
    %c0_i32_1 = arith.constant 0 : i32
    return %c0_i32, %c0_i32_0 : i32, i32
  }
  func.func @transform_5(%arg0: i32, %arg1: i32) -> (i32, i32) {
    %c0_i32 = arith.constant 0 : i32
    %c0_i32_0 = arith.constant 0 : i32
    %c0_i32_1 = arith.constant 0 : i32
    return %c0_i32, %c0_i32_0 : i32, i32
  }
  func.func @transform_6(%arg0: i32, %arg1: i32) -> (i32, i32, i32) {
    %c0_i32 = arith.constant 0 : i32
    %c0_i32_0 = arith.constant 0 : i32
    %c0_i32_1 = arith.constant 0 : i32
    return %c0_i32, %arg0, %c0_i32_0 : i32, i32, i32
  }
}

</mosaic_0001>

<bundles_post_ra>
// kernel: tpu_custom_call.1
= control target key start
LH: loop header
LB: loop body
LE: loop exit
PB: predicated region body
PF: predicated region fallthrough
CT: control target
= control target key end

     0   :  { %11 = vsyncpa [#allocation5], 0  ;;  %s667_s0 = inlined_call_operand.vmem [shape: f32[16,2], index: 0, kind: input, shape index: {}]   ;;  %s668_s1 = inlined_call_operand.hbm [shape: f32[2,16,32], index: 1, kind: input, shape index: {}]   ;;  %s669_s2 = inlined_call_operand.vmem [shape: bf16[16,16], index: 2, kind: input, shape index: {}]   ;;  %s670_s3 = inlined_call_operand.hbm [shape: f32[32,64], index: 3, kind: input, shape index: {}]   ;;  %s671_s4 = inlined_call_operand.vmem [shape: f32[1,64], index: 4, kind: input, shape index: {}]   ;;  %s672_s5 = inlined_call_operand.vmem [shape: f32[1,64], index: 5, kind: input, shape index: {}]   ;;  %s673_s6 = inlined_call_operand.hbm [shape: f32[2,16,64], index: 6, kind: output, shape index: {}]  }
   0x1   :  { %12 = vsyncpa [#allocation8], 0 }
   0x2   :  { %13 = vsyncpa [#allocation6], 0  ;;  %s574_s21 = smov [#allocation4]  }
   0x3   :  { %s21_s22 = sshll.u32 %s574_s21, 4  ;;  %s22_s22 = int_to_ptr.vmem [resolvable:$true] %s21_s22 }
   0x4   :  { %s516_s23 = scalar_lea.vmem %s22_s22, 512  ;;  %p521_p1 = scmp.lt.s32.totalorder %s22_s22, %s22_s22 }
   0x5   :  { %p517_p0 = scmp.ne.s32.totalorder %s22_s22, %s516_s23  ;;  %p522_p2 = scmp.lt.s32.totalorder %s516_s23, %s516_s23 }
   0x7   :  { %p523_p3 = por %p522_p2, %p521_p1 }
   0x9   :  { %p524_p4 = pnand %p523_p3, %p517_p0 }
   0xb   :  { %527 = shalt.err (!%p524_p4)
}
   0xc   :  { %s575_s24 = smov 128   ;;  %s576_s25 = smov 8  }
   0xd   :  { %27 = dma.hbm_to_vmem [thread:$0]  %s668_s1, 512, %s22_s22, [#allocation5], %s575_s24, %s575_s24, %s576_s25  }
   0xe   :  { %s577_s28 = smov [#allocation7]  }
   0xf   :  { %s35_s29 = sshll.u32 %s577_s28, 4  ;;  %s36_s29 = int_to_ptr.vmem [resolvable:$true] %s35_s29 }
  0x10   :  { %s536_s30 = scalar_lea.vmem %s36_s29, 512  ;;  %p541_p6 = scmp.lt.s32.totalorder %s36_s29, %s36_s29 }
  0x11   :  { %p537_p5 = scmp.ne.s32.totalorder %s36_s29, %s536_s30  ;;  %p542_p7 = scmp.lt.s32.totalorder %s536_s30, %s536_s30 }
  0x13   :  { %p543_p8 = por %p542_p7, %p541_p6 }
  0x15   :  { %p544_p9 = pnand %p543_p8, %p537_p5 }
  0x17   :  { %547 = shalt.err (!%p544_p9)
}
  0x18   :  { %41 = dma.hbm_to_vmem [thread:$0]  %s670_s3, 512, %s36_s29, [#allocation8], %s575_s24, %s575_s24, %s576_s25  }
  0x19   :  { %568 = dma.done.wait [#allocation5], 512  }
  0x1a   :  { %569 = vsyncadd [#allocation5], 4294966784 }
  0x1b   :  { %570 = dma.done.wait [#allocation8], 512  }
  0x1c   :  { %571 = vsyncadd [#allocation8], 4294966784  ;;  %v578_v0 = vmov 0.0   ;;  %vm579_vm0 = vmmov 0   ;;  %vm57_vm1 = vcmask 523264   ;;  %v68_v1 = vld [vmem:[#allocation4 + $0x10] sm:$0xff] }
  0x1d   :  { %453 = vmatprep.subr.bf16.mxu0 %v578_v0  ;;  %459 = vmatprep.subr.bf16.mxu1 %v578_v0  ;;  %58 = vst.msk [vmem:[#allocation2] sm:$0xff] %vm57_vm1, %v578_v0  ;;  %59 = vst.msk [vmem:[#allocation2 + $0x8] sm:$0xff] %vm57_vm1, %v578_v0  ;;  %v69_v2 = vld [vmem:[#allocation4 + $0x18] sm:$0xff]  ;;  %v141_v4 = vld [vmem:[%s667_s0] sm:$0xff]  ;;  %s580_s11 = smov 32   ;;  %vm89_vm2 = vcmask 130048  }
  0x1e   :  { %455 = vmatprep.mubr.msk.bf16.mxu0 %vm579_vm0, %v578_v0  ;;  %461 = vmatprep.mubr.msk.bf16.mxu1 %vm579_vm0, %v578_v0  ;;  %v498_v3 = vpack.i.bf16 %v69_v2, %v68_v1  ;;  %v142_v5 = vld [vmem:[%s667_s0 + $0x8] sm:$0xff]  ;;  %v507_v7 = vld [vmem:[%s669_s2] sm:$0xff]   ;;  %vm78_vm3 = vcmask 261120   ;;  %v200_v16 = vld [vmem:[#allocation7 + $0x18] sm:$0xff]  ;;  %vm60_vm4 = vcmask 15360   ;;  %v581_v21 = vmov 0  }
  0x1f   :  { %v143_v6 = vpack.c.bf16 %v142_v5, %v141_v4  ;;  %v65_v9 = vld [vmem:[#allocation4] sm:$0xff]  ;;  %v66_v10 = vld [vmem:[#allocation4 + $0x8] sm:$0xff]  ;;  %v199_v17 = vld [vmem:[#allocation7 + $0x10] sm:$0xff]  ;;  %61 = vst.msk [vmem:[#allocation3] sm:$0xff] %vm60_vm4, %v578_v0  ;;  %504 = vset.pattern.permute.xlu0 %v581_v21  ;;  %503 = vset.pattern.permute.xlu1 %v581_v21  ;;  %s582_s0 = smov 96   ;;  %v583_v41 = vmov 1  }
  0x20   :  { %499 = vrot.lane.b32.xlu0 %v498_v3, %s580_s11  ;;  %v198_v18 = vld [vmem:[#allocation7 + $0x8] sm:$0xff]  ;;  %v197_v19 = vld [vmem:[#allocation7] sm:$0xff]  ;;  %62 = vst.msk [vmem:[#allocation3 + $0x8] sm:$0xff] %vm60_vm4, %v578_v0 }
  0x21   :  { %460 = vmatpush3.bf16.msra.mxu1 %v143_v6  ;;  %v431_v44 = vld [vmem:[%s671_s4] ss:$0 sm:$0xff]  ;;  %s584_s4 = smov [#allocation9]  }
  0x22   :  { %476 = vmatprep.subr.mxu1 %v200_v16  ;;  %v434_v49 = vld [vmem:[%s672_s5] ss:$0 sm:$0xff]  ;;  %s415_s17 = sshll.u32 %s584_s4, 4  ;;  %s416_s17 = int_to_ptr.vmem [resolvable:$true] %s415_s17 }
  0x23   :  { %s548_s5 = scalar_lea.vmem %s416_s17, 512  ;;  %p553_p11 = scmp.lt.s32.totalorder %s416_s17, %s416_s17 }
  0x24   :  { %462 = vmatmul.mubr.msk.bf16.vlgmr.msra.gmra.mxu1 %vm89_vm2, %v507_v7  ;;  %v82_v29 = vld [vmem:[#allocation2] sm:$0xff]  ;;  %v83_v33 = vld [vmem:[#allocation2 + $0x8] sm:$0xff]  ;;  %p549_p10 = scmp.ne.s32.totalorder %s416_s17, %s548_s5  ;;  %p554_p12 = scmp.lt.s32.totalorder %s548_s5, %s548_s5 }
  0x25   :  { %477 = vmatpush3.msra.mxu1 %v200_v16 }
  0x26   :  { %478 = vmatprep.subr.mxu1 %v199_v17  ;;  %v139_v25 = vld [vmem:[#allocation3] sm:$0xff]  ;;  %p555_p13 = por %p554_p12, %p553_p11 }
  0x27   :  { %479 = vmatpush3.msra.mxu1 %v199_v17  ;;  %v140_v26 = vld [vmem:[#allocation3 + $0x8] sm:$0xff] }
  0x28   :  { %480 = vmatprep.subr.mxu1 %v198_v18  ;;  %p556_p0 = pnand %p555_p13, %p549_p10 }
  0x29   :  { %481 = vmatpush3.msra.mxu1 %v198_v18 }
  0x2a   :  { %482 = vmatprep.subr.mxu1 %v197_v19 }
  0x2b   :  { %483 = vmatpush3.msra.mxu1 %v197_v19 }
  0x92   :  { %v500_v8 = vpop.permute.xlu0 %499 }
  0x93   :  { %v502_v11 = vunpack.i.h.bf16 %v500_v8  ;;  %v501_v12 = vunpack.i.l.bf16 %v500_v8 }
  0x95   :  { %v79_v13 = vsel %vm78_vm3, %v65_v9, %v501_v12  ;;  %v80_v14 = vsel %vm78_vm3, %v66_v10, %v502_v11 }
  0x96   :  { %v81_v15 = vpack.c.bf16 %v80_v14, %v79_v13 }
  0x98   :  { %454 = vmatpush3.bf16.msra.mxu0 %v81_v15 }
  0x99   :  { %465 = vmatprep.subr.mxu0 %v200_v16 }
  0x9b   :  { %456 = vmatmul.mubr.msk.bf16.vlgmr.msra.gmra.mxu0 %vm89_vm2, %v507_v7 }
  0x9c   :  { %466 = vmatpush3.msra.mxu0 %v200_v16 }
  0x9d   :  { %467 = vmatprep.subr.mxu0 %v199_v17 }
  0x9e   :  { %468 = vmatpush3.msra.mxu0 %v199_v17 }
  0x9f   :  { %469 = vmatprep.subr.mxu0 %v198_v18 }
  0xa0   :  { %470 = vmatpush3.msra.mxu0 %v198_v18 }
  0xa1   :  { %471 = vmatprep.subr.mxu0 %v197_v19 }
  0xa2   :  { %472 = vmatpush3.msra.mxu0 %v197_v19 }
  0xe4   :  { %v178_v20 = vpop.f32.mrf.mxu1 }
  0xe5   :  { %v185_v27 = vadd.f32 %v178_v20, %v139_v25 }
  0xe6   :  { %v463_v22 = vpop.f32.mrf.mxu1 }
  0xe7   :  { %188 = vst.msk [vmem:[#allocation3] sm:$0xff] %vm60_vm4, %v185_v27 }
  0xe8   :  { %v181_v23 = vpop.f32.mrf.mxu1 }
  0xe9   :  { %v186_v28 = vadd.f32 %v181_v23, %v140_v26 }
  0xea   :  { %v464_v24 = vpop.f32.mrf.mxu1 }
  0xeb   :  { %189 = vst.msk [vmem:[#allocation3 + $0x8] sm:$0xff] %vm60_vm4, %v186_v28 }
  0xee   :  { %v195_v40 = vld [vmem:[#allocation3] sm:$0xff] }
  0xf2   :  { %v196_v38 = vld [vmem:[#allocation3 + $0x8] sm:$0xff] }
 0x15b   :  { %v127_v30 = vpop.f32.mrf.mxu0 }
 0x15c   :  { %v134_v31 = vadd.f32 %v127_v30, %v82_v29 }
 0x15d   :  { %v457_v32 = vpop.f32.mrf.mxu0 }
 0x15e   :  { %137 = vst.msk [vmem:[#allocation2] sm:$0xff] %vm57_vm1, %v134_v31 }
 0x15f   :  { %v130_v34 = vpop.f32.mrf.mxu0 }
 0x160   :  { %v135_v35 = vadd.f32 %v130_v34, %v83_v33 }
 0x161   :  { %v458_v36 = vpop.f32.mrf.mxu0 }
 0x162   :  { %138 = vst.msk [vmem:[#allocation2 + $0x8] sm:$0xff] %vm57_vm1, %v135_v35 }
 0x165   :  { %v193_v37 = vld [vmem:[#allocation2] sm:$0xff] }
 0x166   :  { %322 = vrot.lane.b32.xlu0 %v193_v37, %s582_s0  ;;  %473 = vmatprep.mubr.msk.f32.mxu0 %vm78_vm3, %v193_v37 }
 0x169   :  { %v194_v39 = vld [vmem:[#allocation2 + $0x8] sm:$0xff] }
 0x16a   :  { %324 = vrot.lane.b32.xlu1 %v194_v39, %s582_s0  ;;  %474 = vmatmul.mubr.msk.f32.vlgmr.msra.gmra.mxu0 %vm78_vm3, %v194_v39 }
 0x16b   :  { %210 = vperm.xlu0 %504, %v196_v38  }
 0x16e   :  { %205 = vperm.xlu1 %503, %v195_v40  }
 0x16f   :  { %506 = vset.pattern.permute.xlu0 %v583_v41 }
 0x172   :  { %505 = vset.pattern.permute.xlu1 %v583_v41 }
 0x173   :  { %313 = vperm.xlu1 %505, %v195_v40  }
 0x177   :  { %317 = vperm.xlu1 %505, %v196_v38  }
 0x1d8   :  { %v323_v42 = vpop.permute.xlu0 %322 }
 0x1d9   :  { %484 = vmatprep.mubr.msk.f32.mxu1 %vm78_vm3, %v323_v42 }
 0x1dc   :  { %v325_v43 = vpop.permute.xlu1 %324 }
 0x1dd   :  { %485 = vmatmul.mubr.msk.f32.vlgmr.msra.gmra.mxu1 %vm78_vm3, %v325_v43 }
 0x1e6   :  { %v211_v45 = vpop.permute.xlu0 %210 }
 0x1e7   :  { %v220_v47 = vmul.f32 %v431_v44, %v211_v45 }
 0x1e9   :  { %v206_v46 = vpop.permute.xlu1 %205 }
 0x1ea   :  { %v219_v48 = vmul.f32 %v431_v44, %v206_v46 }
 0x1ee   :  { %v314_v56 = vpop.permute.xlu1 %313 }
 0x1ef   :  { %v320_v60 = vmul.f32 %v431_v44, %v314_v56 }
 0x1f2   :  { %v318_v57 = vpop.permute.xlu1 %317 }
 0x1f3   :  { %v321_v58 = vmul.f32 %v431_v44, %v318_v57 }
 0x22a   :  { %v475_v50 = vpop.f32.mrf.mxu0 }
 0x22b   :  { %v299_v51 = vadd.f32 %v475_v50, %v220_v47 }
 0x22c   :  { %v293_v52 = vpop.f32.mrf.mxu0 }
 0x22d   :  { %v309_v53 = vadd.f32 %v434_v49, %v299_v51  ;;  %v294_v54 = vadd.f32 %v293_v52, %v219_v48 }
 0x22f   :  { %311 = vst.msk [vmem:[#allocation9 + $0x8] sm:$0xff] %vm57_vm1, %v309_v53  ;;  %v308_v55 = vadd.f32 %v434_v49, %v294_v54 }
 0x231   :  { %310 = vst.msk [vmem:[#allocation9] sm:$0xff] %vm57_vm1, %v308_v55 }
 0x29d   :  { %v486_v59 = vpop.f32.mrf.mxu1 }
 0x29e   :  { %v402_v61 = vadd.f32 %v486_v59, %v321_v58 }
 0x29f   :  { %v396_v62 = vpop.f32.mrf.mxu1 }
 0x2a0   :  { %v406_v63 = vadd.f32 %v434_v49, %v402_v61  ;;  %v397_v0 = vadd.f32 %v396_v62, %v320_v60 }
 0x2a2   :  { %409 = vst.msk [vmem:[#allocation9 + $0x18] sm:$0xff] %vm57_vm1, %v406_v63  ;;  %v405_v1 = vadd.f32 %v434_v49, %v397_v0 }
 0x2a4   :  { %408 = vst.msk [vmem:[#allocation9 + $0x10] sm:$0xff] %vm57_vm1, %v405_v1 }
 0x2a5   :  { %559 = shalt.err (!%p556_p0)
}
 0x2a6   :  { %421 = dma.vmem_to_hbm [thread:$0]  %s416_s17, 512, %s673_s6, [#allocation6], %s575_s24, %s575_s24, %s576_s25  }
 0x2a7   :  { %572 = dma.done.wait [#allocation6], 512  }
 0x2a8   :  { %573 = vsyncadd [#allocation6], 4294966784 }
 0x2a9   :  { %425 = vsyncpa [#allocation5], 1 }
 0x2aa   :  { %426 = vsyncpa [#allocation8], 1 }
 0x2ab   :  { %427 = vsyncpa [#allocation6], 1 }

</bundles_post_ra>
